<compile_context>
chip_gen: v5e
topology: v5e:2x2
jax: 0.10.0
libtpu: 0.0.40
codegen_flags: <defaults>
</compile_context>

<pallas_src>
import jax
import jax.numpy as jnp
from jax.experimental import pallas as pl
from jax.experimental.pallas import tpu as pltpu

HIDDEN = 128
OUT_PAD = 128   # lane-dense padded output width
MAX_TB = 4096   # max batch-tile rows (out block = 4096*128*2 B = 1 MiB bf16, trivial VMEM)


def _round_up(a, m):
    return (a + m - 1) // m * m


def _cdiv(a, b):
    return -(-a // b)


def _softplus(r):
    # numerically-stable softplus (wrapper-side only; sampling is hoisted out of the kernel)
    return jnp.maximum(r, 0.0) + jnp.log(1.0 + jnp.exp(-jnp.abs(r)))


def _mlp_kernel(x_ref, w1_ref, b1_ref, w2_ref, b2_ref, w3_ref, b3_ref, o_ref):
    # layer 1 (frozen -> deterministic mu weights): bf16 MXU matmul, f32 accumulate + epilogue
    h1 = jnp.dot(x_ref[...], w1_ref[...], preferred_element_type=jnp.float32)
    h1 = jnp.maximum(h1 + b1_ref[...], 0.0)

    # layer 2 (frozen) + ReLU
    h2 = jnp.dot(h1.astype(jnp.bfloat16), w2_ref[...], preferred_element_type=jnp.float32)
    h2 = jnp.maximum(h2 + b2_ref[...], 0.0)

    # layer 3 (unfrozen): W3/b3 are pre-sampled in the wrapper (constant across grid steps).
    # bf16 MXU matmul, f32 accumulate + bias, stored as bf16 (halves writeback traffic).
    o = jnp.dot(h2.astype(jnp.bfloat16), w3_ref[...], preferred_element_type=jnp.float32)
    o_ref[...] = (o + b3_ref[...]).astype(o_ref.dtype)


def _sample_eps(key, hidden, out_pad):
    kw, kb = jax.random.split(key)
    eps_w = jax.random.normal(kw, (hidden, out_pad), jnp.float32)
    eps_b = jax.random.normal(kb, (1, out_pad), jnp.float32)
    return eps_w, eps_b


def _sample_layer3(params, key):
    # blitz freeze=False semantics: fresh eps (hence fresh W3/b3) on every forward call.
    hidden = params["w3mu_t"].shape[0]
    out_pad = params["w3mu_t"].shape[1]
    eps_w, eps_b = _sample_eps(key, hidden, out_pad)
    w3 = (params["w3mu_t"] + _softplus(params["w3rho_t"]) * eps_w).astype(jnp.bfloat16)
    b3 = params["b3mu"] + _softplus(params["b3rho"]) * eps_b   # f32 bias for the epilogue
    return w3, b3


def _pick_tile(batch):
    # <=8 rows: one full-array block (block dim == array dim is always legal).
    # Otherwise split into 2 balanced, 8-aligned tiles (keeps both v7x TCs busy), capped at MAX_TB.
    if batch <= 8:
        return batch
    return min(_round_up(_cdiv(batch, 2), 8), MAX_TB)


def _forward(x, params, key):
    B, in_dim = x.shape
    hidden = params["w2t"].shape[0]
    out_pad = params["w3mu_t"].shape[1]
    out_dim = params["out_dim"]

    w3, b3 = _sample_layer3(params, key)   # hoisted sampling (constant across tiles)

    tb = _pick_tile(B)
    num_tiles = _cdiv(B, tb)

    # No batch padding / copy: Pallas masks the partial last block; rows are independent.
    x_b = x.astype(jnp.bfloat16)

    flops = 2 * B * (in_dim * hidden + hidden * hidden + hidden * out_pad)
    bytes_accessed = (
        x_b.size * 2 + B * out_pad * 2                                   # x in, bf16 slab out
        + params["w1t"].size * 2 + params["w2t"].size * 2 + w3.size * 2  # bf16 weights
        + (params["b1"].size + params["b2"].size + b3.size) * 4          # f32 biases
    )

    resident = lambda i: (0, 0)   # weights/biases stay pinned in VMEM across grid steps

    out = pl.pallas_call(
        _mlp_kernel,
        out_shape=jax.ShapeDtypeStruct((B, out_pad), jnp.bfloat16),
        grid=(num_tiles,),
        in_specs=[
            pl.BlockSpec((tb, in_dim), lambda i: (i, 0)),     # x (streamed)
            pl.BlockSpec((in_dim, hidden), resident),         # W1^T (bf16)
            pl.BlockSpec((1, hidden), resident),              # b1 (f32)
            pl.BlockSpec((hidden, hidden), resident),         # W2^T (bf16)
            pl.BlockSpec((1, hidden), resident),              # b2 (f32)
            pl.BlockSpec((hidden, out_pad), resident),        # sampled W3^T (bf16)
            pl.BlockSpec((1, out_pad), resident),             # sampled b3 (f32)
        ],
        out_specs=pl.BlockSpec((tb, out_pad), lambda i: (i, 0)),  # lane-dense bf16 slab
        compiler_params=pltpu.CompilerParams(
            dimension_semantics=("parallel",),   # batch tiles shard across v7x's two TCs
        ),
        cost_estimate=pl.CostEstimate(
            flops=flops, transcendentals=0, bytes_accessed=bytes_accessed),
    )(x_b, params["w1t"], params["b1"], params["w2t"], params["b2"], w3, b3)

    return out[:, :out_dim].astype(jnp.float32)


def bayesian_regressor_forward(t, params, key):
    """Mirrors BayesianRegressor.forward: tensor -> q_values, (tensor, action) -> gathered q_value."""
    if isinstance(t, tuple):
        x, action = t
        q_values = _forward(x, params, key)
        return jnp.take_along_axis(q_values, action[:, None], axis=1)[:, 0]
    return _forward(t, params, key)


def make_params(key, input_dim, output_dim, hidden=HIDDEN, out_pad=OUT_PAD):
    """Synthetic parameters mirroring BayesianLinear shapes.

    PyTorch weight layout is (out, in); we store transposed (in, out), lane-padded for layer 3.
    Layers 1/2 are frozen -> mu only (stored bf16 for the MXU). Layer 3 keeps mu/rho in f32;
    sampling happens per forward call in the wrapper (hoisted out of the grid loop).
    """
    ks = jax.random.split(key, 6)
    w1_mu = 0.1 * jax.random.normal(ks[0], (hidden, input_dim), jnp.float32)
    b1_mu = 0.1 * jax.random.normal(ks[1], (hidden,), jnp.float32)
    w2_mu = 0.1 * jax.random.normal(ks[2], (hidden, hidden), jnp.float32)
    b2_mu = 0.1 * jax.random.normal(ks[3], (hidden,), jnp.float32)
    w3_mu = 0.1 * jax.random.normal(ks[4], (output_dim, hidden), jnp.float32)
    b3_mu = 0.1 * jax.random.normal(ks[5], (output_dim,), jnp.float32)
    rho_init = -7.0  # blitz default posterior_rho_init

    # lane-pad layer-3 params to out_pad output lanes (padded columns are sliced off)
    w3mu_t = jnp.zeros((hidden, out_pad), jnp.float32).at[:, :output_dim].set(w3_mu.T)
    w3rho_t = jnp.full((hidden, out_pad), rho_init, jnp.float32)
    b3mu = jnp.zeros((1, out_pad), jnp.float32).at[:, :output_dim].set(b3_mu[None, :])
    b3rho = jnp.full((1, out_pad), rho_init, jnp.float32)

    return {
        "w1t": w1_mu.T.astype(jnp.bfloat16), "b1": b1_mu.reshape(1, hidden),
        "w2t": w2_mu.T.astype(jnp.bfloat16), "b2": b2_mu.reshape(1, hidden),
        "w3mu_t": w3mu_t, "w3rho_t": w3rho_t,
        "b3mu": b3mu, "b3rho": b3rho,
        "out_dim": output_dim,
    }


def _reference(x, params, key):
    """Pure-JAX reference mirroring the kernel's math (same bf16 casts, same eps draw, bf16 store)."""
    out_dim = params["out_dim"]
    w3, b3 = _sample_layer3(params, key)

    xb = x.astype(jnp.bfloat16)
    h1 = jnp.maximum(
        jnp.dot(xb, params["w1t"], preferred_element_type=jnp.float32) + params["b1"], 0.0)
    h2 = jnp.maximum(
        jnp.dot(h1.astype(jnp.bfloat16), params["w2t"],
                preferred_element_type=jnp.float32) + params["b2"], 0.0)
    o = jnp.dot(h2.astype(jnp.bfloat16), w3, preferred_element_type=jnp.float32) + b3
    o = o.astype(jnp.bfloat16).astype(jnp.float32)   # match the kernel's bf16 output store
    return o[:, :out_dim]


if __name__ == "__main__":
    key = jax.random.PRNGKey(0)
    k_x, k_p, k_a, k_s, k_x2 = jax.random.split(key, 5)

    batch, input_dim, output_dim = 8, 16, 4
    x = jax.random.normal(k_x, (batch, input_dim), jnp.float32)
    params = make_params(k_p, input_dim, output_dim)

    # Non-tuple path: q_values for all actions (fresh layer-3 weight sample, blitz semantics).
    q_values = bayesian_regressor_forward(x, params, k_s)
    q_values = jax.block_until_ready(q_values)

    # Tuple path: gather q-value of the chosen action (same kernel, glue gather).
    action = jax.random.randint(k_a, (batch,), 0, output_dim)
    q_value = bayesian_regressor_forward((x, action), params, k_s)
    q_value = jax.block_until_ready(q_value)

    ref = _reference(x, params, k_s)
    assert q_values.shape == (batch, output_dim)
    assert q_value.shape == (batch,)
    assert jnp.allclose(q_values, ref, atol=5e-3, rtol=5e-3), (
        float(jnp.max(jnp.abs(q_values - ref))))
    ref_q = jnp.take_along_axis(ref, action[:, None], axis=1)[:, 0]
    assert jnp.allclose(q_value, ref_q, atol=5e-3, rtol=5e-3)

    # Second check: batch not a multiple of the tile -> exercises the 2-tile + masked-tail path.
    batch2 = 20
    x2 = jax.random.normal(k_x2, (batch2, input_dim), jnp.float32)
    q2 = jax.block_until_ready(bayesian_regressor_forward(x2, params, k_s))
    ref2 = _reference(x2, params, k_s)
    assert q2.shape == (batch2, output_dim)
    assert jnp.allclose(q2, ref2, atol=5e-3, rtol=5e-3), (
        float(jnp.max(jnp.abs(q2 - ref2))))

    # TODO(synk): @variational_estimator training utilities (KL / ELBO sampling loops) are not
    # part of the forward pass and are not implemented here.
    print("KERNEL_OK")
</pallas_src>

<mosaic_0001>
module attributes {stable_mosaic.version = 11 : i64} {
  func.func @_mlp_kernel(%arg0: i32, %arg1: memref<8x16xbf16, #tpu.memory_space<vmem>>, %arg2: memref<16x128xbf16, #tpu.memory_space<vmem>>, %arg3: memref<1x128xf32, #tpu.memory_space<vmem>>, %arg4: memref<128x128xbf16, #tpu.memory_space<vmem>>, %arg5: memref<1x128xf32, #tpu.memory_space<vmem>>, %arg6: memref<128x128xbf16, #tpu.memory_space<vmem>>, %arg7: memref<1x128xf32, #tpu.memory_space<vmem>>, %arg8: memref<8x128xbf16, #tpu.memory_space<vmem>>) attributes {dimension_semantics = [#tpu.dimension_semantics<parallel>], iteration_bounds = array<i64: 1>, scalar_prefetch = 0 : i64, scratch_operands = 0 : i64, tpu.core_type = #tpu.core_type<tc>, window_params = [{transform_indices = @transform_0, window_bounds = array<i64: 8, 16>}, {pipeline_mode = #tpu.pipeline_mode<synchronous>, transform_indices = @transform_1, window_bounds = array<i64: 16, 128>}, {pipeline_mode = #tpu.pipeline_mode<synchronous>, transform_indices = @transform_2, window_bounds = array<i64: 1, 128>}, {pipeline_mode = #tpu.pipeline_mode<synchronous>, transform_indices = @transform_3, window_bounds = array<i64: 128, 128>}, {pipeline_mode = #tpu.pipeline_mode<synchronous>, transform_indices = @transform_4, window_bounds = array<i64: 1, 128>}, {pipeline_mode = #tpu.pipeline_mode<synchronous>, transform_indices = @transform_5, window_bounds = array<i64: 128, 128>}, {pipeline_mode = #tpu.pipeline_mode<synchronous>, transform_indices = @transform_6, window_bounds = array<i64: 1, 128>}, {transform_indices = @transform_7, window_bounds = array<i64: 8, 128>}]} {
    %c0 = arith.constant 0 : index
    %c0_0 = arith.constant 0 : index
    %0 = vector.load %arg1[%c0, %c0_0] : memref<8x16xbf16, #tpu.memory_space<vmem>>, vector<8x16xbf16>
    %c0_1 = arith.constant 0 : index
    %c0_2 = arith.constant 0 : index
    %1 = vector.load %arg2[%c0_1, %c0_2] : memref<16x128xbf16, #tpu.memory_space<vmem>>, vector<16x128xbf16>
    %cst = arith.constant dense<0.000000e+00> : vector<8x128xf32>
    %2 = tpu.matmul %0, %1, %cst {dimension_numbers = #tpu.dot_dimension_numbers<[1], [0], [0], [1], [0, 0, 1, 1], [], []>} : vector<8x16xbf16>, vector<16x128xbf16>, vector<8x128xf32> -> vector<8x128xf32>
    %c0_3 = arith.constant 0 : index
    %c0_4 = arith.constant 0 : index
    %3 = vector.load %arg3[%c0_3, %c0_4] : memref<1x128xf32, #tpu.memory_space<vmem>>, vector<1x128xf32>
    %4 = vector.broadcast %3 : vector<1x128xf32> to vector<8x128xf32>
    %5 = arith.addf %2, %4 : vector<8x128xf32>
    %cst_5 = arith.constant 0.000000e+00 : f32
    %6 = vector.broadcast %cst_5 : f32 to vector<8x128xf32>
    %7 = arith.maximumf %5, %6 : vector<8x128xf32>
    %8 = arith.truncf %7 : vector<8x128xf32> to vector<8x128xbf16>
    %c0_6 = arith.constant 0 : index
    %c0_7 = arith.constant 0 : index
    %9 = vector.load %arg4[%c0_6, %c0_7] : memref<128x128xbf16, #tpu.memory_space<vmem>>, vector<128x128xbf16>
    %cst_8 = arith.constant dense<0.000000e+00> : vector<8x128xf32>
    %10 = tpu.matmul %8, %9, %cst_8 {dimension_numbers = #tpu.dot_dimension_numbers<[1], [0], [0], [1], [0, 0, 1, 1], [], []>} : vector<8x128xbf16>, vector<128x128xbf16>, vector<8x128xf32> -> vector<8x128xf32>
    %c0_9 = arith.constant 0 : index
    %c0_10 = arith.constant 0 : index
    %11 = vector.load %arg5[%c0_9, %c0_10] : memref<1x128xf32, #tpu.memory_space<vmem>>, vector<1x128xf32>
    %12 = vector.broadcast %11 : vector<1x128xf32> to vector<8x128xf32>
    %13 = arith.addf %10, %12 : vector<8x128xf32>
    %cst_11 = arith.constant 0.000000e+00 : f32
    %14 = vector.broadcast %cst_11 : f32 to vector<8x128xf32>
    %15 = arith.maximumf %13, %14 : vector<8x128xf32>
    %16 = arith.truncf %15 : vector<8x128xf32> to vector<8x128xbf16>
    %c0_12 = arith.constant 0 : index
    %c0_13 = arith.constant 0 : index
    %17 = vector.load %arg6[%c0_12, %c0_13] : memref<128x128xbf16, #tpu.memory_space<vmem>>, vector<128x128xbf16>
    %cst_14 = arith.constant dense<0.000000e+00> : vector<8x128xf32>
    %18 = tpu.matmul %16, %17, %cst_14 {dimension_numbers = #tpu.dot_dimension_numbers<[1], [0], [0], [1], [0, 0, 1, 1], [], []>} : vector<8x128xbf16>, vector<128x128xbf16>, vector<8x128xf32> -> vector<8x128xf32>
    %c0_15 = arith.constant 0 : index
    %c0_16 = arith.constant 0 : index
    %19 = vector.load %arg7[%c0_15, %c0_16] : memref<1x128xf32, #tpu.memory_space<vmem>>, vector<1x128xf32>
    %20 = vector.broadcast %19 : vector<1x128xf32> to vector<8x128xf32>
    %21 = arith.addf %18, %20 : vector<8x128xf32>
    %22 = arith.truncf %21 : vector<8x128xf32> to vector<8x128xbf16>
    %c0_17 = arith.constant 0 : index
    %c0_18 = arith.constant 0 : index
    %23 = vector.load %arg8[%c0_17, %c0_18] : memref<8x128xbf16, #tpu.memory_space<vmem>>, vector<8x128xbf16>
    tpu.vector_store %arg8[%c0_17, %c0_18], %22 {strides = array<i32>} : memref<8x128xbf16, #tpu.memory_space<vmem>>, vector<8x128xbf16>,
    return
  }
  func.func @transform_0(%arg0: i32) -> (i32, i32) {
    %c0_i32 = arith.constant 0 : i32
    %c0_i32_0 = arith.constant 0 : i32
    return %arg0, %c0_i32 : i32, i32
  }
  func.func @transform_1(%arg0: i32) -> (i32, i32) {
    %c0_i32 = arith.constant 0 : i32
    %c0_i32_0 = arith.constant 0 : i32
    %c0_i32_1 = arith.constant 0 : i32
    return %c0_i32, %c0_i32_0 : i32, i32
  }
  func.func @transform_2(%arg0: i32) -> (i32, i32) {
    %c0_i32 = arith.constant 0 : i32
    %c0_i32_0 = arith.constant 0 : i32
    %c0_i32_1 = arith.constant 0 : i32
    return %c0_i32, %c0_i32_0 : i32, i32
  }
  func.func @transform_3(%arg0: i32) -> (i32, i32) {
    %c0_i32 = arith.constant 0 : i32
    %c0_i32_0 = arith.constant 0 : i32
    %c0_i32_1 = arith.constant 0 : i32
    return %c0_i32, %c0_i32_0 : i32, i32
  }
  func.func @transform_4(%arg0: i32) -> (i32, i32) {
    %c0_i32 = arith.constant 0 : i32
    %c0_i32_0 = arith.constant 0 : i32
    %c0_i32_1 = arith.constant 0 : i32
    return %c0_i32, %c0_i32_0 : i32, i32
  }
  func.func @transform_5(%arg0: i32) -> (i32, i32) {
    %c0_i32 = arith.constant 0 : i32
    %c0_i32_0 = arith.constant 0 : i32
    %c0_i32_1 = arith.constant 0 : i32
    return %c0_i32, %c0_i32_0 : i32, i32
  }
  func.func @transform_6(%arg0: i32) -> (i32, i32) {
    %c0_i32 = arith.constant 0 : i32
    %c0_i32_0 = arith.constant 0 : i32
    %c0_i32_1 = arith.constant 0 : i32
    return %c0_i32, %c0_i32_0 : i32, i32
  }
  func.func @transform_7(%arg0: i32) -> (i32, i32) {
    %c0_i32 = arith.constant 0 : i32
    %c0_i32_0 = arith.constant 0 : i32
    return %arg0, %c0_i32 : i32, i32
  }
}

</mosaic_0001>

<bundles_post_ra>
// kernel: tpu_custom_call.1
= control target key start
LH: loop header
LB: loop body
LE: loop exit
PB: predicated region body
PF: predicated region fallthrough
CT: control target
= control target key end

     0   :  { %12 = vsyncpa [#allocation3], 0  ;;  %s601_s0 = inlined_call_operand.hbm [shape: bf16[8,16], index: 0, kind: input, shape index: {}]   ;;  %s602_s1 = inlined_call_operand.hbm [shape: bf16[16,128], index: 1, kind: input, shape index: {}]   ;;  %s603_s2 = inlined_call_operand.vmem [shape: f32[1,128], index: 2, kind: input, shape index: {}]   ;;  %s604_s3 = inlined_call_operand.hbm [shape: bf16[128,128], index: 3, kind: input, shape index: {}]   ;;  %s605_s4 = inlined_call_operand.vmem [shape: f32[1,128], index: 4, kind: input, shape index: {}]   ;;  %s606_s5 = inlined_call_operand.hbm [shape: bf16[128,128], index: 5, kind: input, shape index: {}]   ;;  %s607_s6 = inlined_call_operand.vmem [shape: f32[1,128], index: 6, kind: input, shape index: {}]   ;;  %s608_s7 = inlined_call_operand.hbm [shape: bf16[8,128], index: 7, kind: output, shape index: {}]  }
   0x1   :  { %13 = vsyncpa [#allocation6], 0 }
   0x2   :  { %14 = vsyncpa [#allocation9], 0  ;;  %s31_s26 = sshll.u32 %s602_s1, 4  ;;  %s32_s26 = int_to_ptr.hbm [resolvable:$true] %s31_s26 }
   0x3   :  { %15 = vsyncpa [#allocation4], 0  ;;  %s530_s27 = smov [#allocation5]   ;;  %s21_s8 = sshll.u32 %s601_s0, 4  ;;  %s22_s8 = int_to_ptr.hbm [resolvable:$true] %s21_s8 }
   0x4   :  { %s33_s28 = sshll.u32 %s530_s27, 4  ;;  %s531_s9 = smov 64   ;;  %s34_s28 = int_to_ptr.vmem [resolvable:$true] %s33_s28 }
   0x5   :  { %s532_s10 = smov 4   ;;  %s533_s11 = smov [#allocation2]  }
   0x6   :  { %39 = dma.hbm_to_vmem [thread:$0]  %s32_s26, 128, %s34_s28, [#allocation6], %s531_s9, %s531_s9, %s532_s10  }
   0x7   :  { %s23_s12 = sshll.u32 %s533_s11, 4  ;;  %s46_s15 = sshll.u32 %s604_s3, 4  ;;  %s24_s12 = int_to_ptr.vmem [resolvable:$true] %s23_s12  ;;  %s47_s15 = int_to_ptr.hbm [resolvable:$true] %s46_s15 }
   0x8   :  { %26 = dma.hbm_to_vmem [thread:$0]  %s22_s8, 64, %s24_s12, [#allocation3]  }
   0x9   :  { %s61_s17 = sshll.u32 %s606_s5, 4  ;;  %s534_s18 = smov [#allocation7]   ;;  %s62_s17 = int_to_ptr.hbm [resolvable:$true] %s61_s17 }
   0xa   :  { %s48_s19 = sshll.u32 %s534_s18, 4  ;;  %s535_s0 = smov [#allocation8]   ;;  %s49_s19 = int_to_ptr.vmem [resolvable:$true] %s48_s19 }
   0xb   :  { %54 = dma.hbm_to_vmem [thread:$0]  %s47_s15, 1024, %s49_s19, [#allocation6], %s531_s9, %s531_s9, %s532_s10  }
   0xc   :  { %s63_s20 = sshll.u32 %s535_s0, 4  ;;  %s64_s20 = int_to_ptr.vmem [resolvable:$true] %s63_s20 }
   0xd   :  { %69 = dma.hbm_to_vmem [thread:$0]  %s62_s17, 1024, %s64_s20, [#allocation9], %s531_s9, %s531_s9, %s532_s10  }
   0xe   :  { %522 = dma.done.wait [#allocation3], 64  }
   0xf   :  { %523 = vsyncadd [#allocation3], 4294967232 }
  0x10   :  { %524 = dma.done.wait [#allocation6], 1152  }
  0x11   :  { %525 = vsyncadd [#allocation6], 4294966144 }
  0x12   :  { %526 = dma.done.wait [#allocation9], 1024  }
  0x13   :  { %527 = vsyncadd [#allocation9], 4294966272  ;;  %v375_v0 = vld [vmem:[#allocation5] sm:$0xff]  ;;  %v89_v2 = vld [vmem:[#allocation2] sm:$0xf]  ;;  %vm102_vm0 = vcmask 130048  }
  0x14   :  { %v383_v1 = vld [vmem:[#allocation7 + $0x38] sm:$0xff]  ;;  %113 = vmatpush.bf16.msra.mxu0 %v375_v0  ;;  %v382_v3 = vld [vmem:[#allocation7 + $0x30] sm:$0xff]  ;;  %v381_v4 = vld [vmem:[#allocation7 + $0x28] sm:$0xff]  ;;  %s536_s24 = smov [#allocation10]   ;;  %s294_s28 = sshll.u32 %s608_s7, 4  ;;  %s295_s28 = int_to_ptr.hbm [resolvable:$true] %s294_s28 }
  0x15   :  { %189 = vmatpush.bf16.msra.mxu1 %v383_v1  ;;  %v380_v5 = vld [vmem:[#allocation7 + $0x20] sm:$0xff]  ;;  %v379_v6 = vld [vmem:[#allocation7 + $0x18] sm:$0xff]  ;;  %v378_v7 = vld [vmem:[#allocation7 + $0x10] sm:$0xff]  ;;  %s292_s25 = sshll.u32 %s536_s24, 4  ;;  %s293_s25 = int_to_ptr.vmem [resolvable:$true] %s292_s25 }
  0x16   :  { %v377_v8 = vld [vmem:[#allocation7 + $0x8] sm:$0xff]  ;;  %v376_v9 = vld [vmem:[#allocation7] sm:$0xff]  ;;  %v391_v10 = vld [vmem:[#allocation8 + $0x38] sm:$0xff] }
  0x17   :  { %310 = vmatmul.msk.bf16.vlgmr.msra.gmra.mxu0 %vm102_vm0, %v89_v2  ;;  %272 = vmatpush.bf16.msra.mxu2 %v391_v10  ;;  %v390_v11 = vld [vmem:[#allocation8 + $0x30] sm:$0xff]  ;;  %v389_v12 = vld [vmem:[#allocation8 + $0x28] sm:$0xff]  ;;  %v388_v13 = vld [vmem:[#allocation8 + $0x20] sm:$0xff] }
  0x18   :  { %v387_v14 = vld [vmem:[#allocation8 + $0x18] sm:$0xff]  ;;  %v386_v15 = vld [vmem:[#allocation8 + $0x10] sm:$0xff]  ;;  %v385_v22 = vld [vmem:[#allocation8 + $0x8] sm:$0xff] }
  0x19   :  { %190 = vmatpush.bf16.msra.mxu1 %v382_v3  ;;  %v399_v16 = vld [vmem:[%s603_s2] ss:$0 sm:$0xff]  ;;  %v384_v23 = vld [vmem:[#allocation8] sm:$0xff] }
  0x1a   :  { %v400_v24 = vld [vmem:[%s605_s4] ss:$0 sm:$0xff] }
  0x1b   :  { %273 = vmatpush.bf16.msra.mxu2 %v390_v11  ;;  %v401_v30 = vld [vmem:[%s607_s6] ss:$0 sm:$0xff] }
  0x1d   :  { %191 = vmatpush.bf16.msra.mxu1 %v381_v4 }
  0x1f   :  { %274 = vmatpush.bf16.msra.mxu2 %v389_v12 }
  0x21   :  { %192 = vmatpush.bf16.msra.mxu1 %v380_v5 }
  0x23   :  { %275 = vmatpush.bf16.msra.mxu2 %v388_v13 }
  0x25   :  { %193 = vmatpush.bf16.msra.mxu1 %v379_v6 }
  0x27   :  { %276 = vmatpush.bf16.msra.mxu2 %v387_v14 }
  0x29   :  { %194 = vmatpush.bf16.msra.mxu1 %v378_v7 }
  0x2b   :  { %277 = vmatpush.bf16.msra.mxu2 %v386_v15 }
  0x2d   :  { %195 = vmatpush.bf16.msra.mxu1 %v377_v8 }
  0x2f   :  { %278 = vmatpush.bf16.msra.mxu2 %v385_v22 }
  0x31   :  { %196 = vmatpush.bf16.msra.mxu1 %v376_v9 }
  0x33   :  { %279 = vmatpush.bf16.msra.mxu2 %v384_v23 }
  0x94   :  { %v115_v17 = vpop.f32.mrf.mxu0 }
  0x95   :  { %v116_v18 = vadd.f32 %v399_v16, %v115_v17 }
  0x97   :  { %v119_v19 = vmax.f32 %v116_v18, 0.0 }
  0x99   :  { %v120_v20 = vpack.c.bf16 %v119_v19, %v119_v19 }
  0x9b   :  { %197 = vmatmul.bf16.vlgmr.msra.gmra.mxu1 %v120_v20 }
  0x9c   :  { %v117_v21 = vpop.f32.mrf.mxu0 }
 0x118   :  { %v198_v25 = vpop.f32.mrf.mxu1 }
 0x119   :  { %v199_v26 = vadd.f32 %v400_v24, %v198_v25 }
 0x11b   :  { %v202_v27 = vmax.f32 %v199_v26, 0.0 }
 0x11d   :  { %v203_v28 = vpack.c.bf16 %v202_v27, %v202_v27 }
 0x11f   :  { %280 = vmatmul.bf16.vlgmr.msra.gmra.mxu2 %v203_v28 }
 0x120   :  { %v200_v29 = vpop.f32.mrf.mxu1 }
 0x1a2   :  { %v281_v31 = vpop.f32.mrf.mxu2 }
 0x1a3   :  { %v282_v32 = vadd.f32 %v401_v30, %v281_v31 }
 0x1a5   :  { %v285_v33 = vpack.c.bf16 %v282_v32, %v282_v32 }
 0x1a7   :  { %286 = vst [vmem:[#allocation10] sm:$0xf] %v285_v33 }
 0x1a8   :  { %297 = dma.vmem_to_hbm [thread:$0]  %s293_s25, 64, %s295_s28, [#allocation4]  }
 0x1aa   :  { %v283_v34 = vpop.f32.mrf.mxu2 }
 0x1ab   :  { %528 = dma.done.wait [#allocation4], 64  }
 0x1ac   :  { %529 = vsyncadd [#allocation4], 4294967232 }
 0x1ad   :  { %302 = vsyncpa [#allocation3], 1 }
 0x1ae   :  { %303 = vsyncpa [#allocation6], 1 }
 0x1af   :  { %304 = vsyncpa [#allocation9], 1 }
 0x1b0   :  { %305 = vsyncpa [#allocation4], 1 }

</bundles_post_ra>
